<compile_context>
chip_gen: v5e
topology: v5e:2x2
jax: 0.10.0
libtpu: 0.0.40
codegen_flags: <defaults>
</compile_context>

<pallas_src>
import jax
import jax.numpy as jnp
from jax import lax
from jax.experimental import pallas as pl
from jax.experimental.pallas import tpu as pltpu

# ---- model hyper-parameters (ModelArgs) ----
D_MODEL = 32
D_STATE = 8
DT_RANK = 4
D_CONV = 4
SEQ_L = 8
EPS = 1e-5


def _affine_pow(a, c, m):
    """(A, C) such that applying x -> a*x + c  `m` times equals x -> A*x + C.

    m is a static Python int >= 1; repeated squaring keeps the dependent-op
    chain ~log2(m) instead of m.
    """
    acc = None
    base_a, base_c = a, c
    mm = m
    while mm:
        if mm & 1:
            if acc is None:
                acc = (base_a, base_c)
            else:
                acc = (acc[0] * base_a, acc[0] * base_c + acc[1])
        mm >>= 1
        if mm:
            base_a, base_c = base_a * base_a, base_a * base_c + base_c
    return acc


def _mamba_kernel(x1_ref, x2_ref, slab_ref, out_ref):
    L, K, n, d = SEQ_L, D_CONV, D_STATE, D_MODEL
    bsz = x1_ref.shape[0]

    # ---- unpack the single lane-dense parameter slab (static slices) ----
    wtop = slab_ref[0:d, :]                          # (d, 4d) weight rows
    w_in_f = wtop[:, 0:2 * d]                        # (d, 2d)  in_proj  [x | res]
    w_dlt = wtop[:, 2 * d:3 * d]                     # (d, d)   x_proj[:, :dt_rank] @ dt_proj
    w_out = wtop[:, 3 * d:4 * d]                     # (d, d)   out_proj
    sm = slab_ref[d:d + 4 + K + n, 0:d]              # (16, d) small row-vectors
    norm_w = sm[0:1, :]
    conv_b = sm[1:2, :]
    b_dt = sm[2:3, :]
    d_par = sm[3:4, :]
    cw = sm[4:4 + K, :]                              # (K, d) cumulative conv taps
    neg_a = sm[4 + K:4 + K + n, :]                   # (n, d) = (-exp(A_log))^T
    w_bc_T = slab_ref[d + 16:d + 16 + 2 * n, 0:d]    # (2n, d): B cols^T then C cols^T

    def rmsnorm(x):
        ms = jnp.mean(x * x, axis=-1, keepdims=True)
        return x * lax.rsqrt(ms + EPS) * norm_w

    def silu(x):
        return x * jax.nn.sigmoid(x)

    # ---- RMSNorm + fused in_proj on stacked [x1; x2] rows (one MXU push).
    # The reference broadcasts each normalized token over all L positions, so
    # every row-wise op runs once per batch row, not per (batch, position). ----
    xs = jnp.concatenate([x1_ref[...], x2_ref[...]], axis=0)              # (2b, d)
    xn = rmsnorm(xs)
    xr = jnp.dot(xn, w_in_f, preferred_element_type=jnp.float32)          # (2b, 2d)
    xc1 = xr[0:bsz, 0:d]                                                  # stream-1 conv input
    xc2 = xr[bsz:, 0:d]                                                   # stream-2 conv input
    res1 = xr[0:bsz, d:2 * d]                                             # (b, d); res_2 is dead code

    # ---- causal depthwise conv + SiLU: constant-over-L input => only K distinct
    # output rows per (stream, batch); one packed slab, one silu. ----
    blocks = [conv_b + cw[r:r + 1, :] * xc1 for r in range(K)]
    blocks += [conv_b + cw[r:r + 1, :] * xc2 for r in range(K)]
    cs = silu(jnp.concatenate(blocks, axis=0))                            # (2K*b, d)
    u_all = cs[0:K * bsz, :]      # stream 1, row r*b + s -> scan input u
    s2_all = cs[K * bsz:, :]      # stream 2, row r*b + s -> delta / B / C source

    # ---- delta via the fused x_proj->dt_proj weight (one MXU push) + softplus.
    # (The reference's x_proj(x_1) is computed but never used; skipped here.) ----
    delta_all = jnp.logaddexp(
        jnp.dot(s2_all, w_dlt, preferred_element_type=jnp.float32) + b_dt, 0.0)  # (K*b, d)
    g_all = delta_all * u_all                                             # (K*b, d)  delta * u

    # ---- B/C produced already transposed: (2n, K*b).  n is on sublanes, so the
    # scan never needs a lane->sublane reshape of B or C. ----
    bc_T = lax.dot_general(w_bc_T, s2_all,
                           dimension_numbers=(((1,), (1,)), ((), ())),
                           preferred_element_type=jnp.float32)            # (2n, K*b)

    # ---- selective scan.  Only y at the last position feeds the output; all steps
    # t >= K-1 share one transition, applied (L-K+1) times via repeated squaring.
    # (Assumes L >= K >= 2, true for this config.) ----
    y_rows = []
    for s in range(bsz):
        def da(r, s=s):
            x = r * bsz + s
            return jnp.exp(neg_a * delta_all[x:x + 1, :])                 # (n, d)

        def dbu(r, s=s):
            x = r * bsz + s
            return bc_T[0:n, x:x + 1] * g_all[x:x + 1, :]                 # (n,1)*(1,d) -> (n,d)

        state = dbu(0)                                                    # zero init folded in
        for r in range(1, K - 1):
            state = da(r) * state + dbu(r)
        tail_a, tail_c = _affine_pow(da(K - 1), dbu(K - 1), L - K + 1)
        state = tail_a * state + tail_c

        x_last = (K - 1) * bsz + s
        c_col = bc_T[n:2 * n, x_last:x_last + 1]                          # (n, 1) C at last pos
        y_s = jnp.sum(state * c_col, axis=0, keepdims=True)               # (1, d)
        y_s = y_s + u_all[x_last:x_last + 1, :] * d_par                   # + u * D at last pos
        y_rows.append(y_s)
    y = jnp.concatenate(y_rows, axis=0) if bsz > 1 else y_rows[0]         # (b, d)

    # ---- gate, out_proj, final RMSNorm (reference reuses the same norm weight and
    # returns only the last position, which is exactly this row). ----
    y = y * silu(res1)
    out = jnp.dot(y, w_out, preferred_element_type=jnp.float32)           # (b, d)
    out_ref[...] = rmsnorm(out)


def mamba_block(x1, x2, params):
    bsz, d = x1.shape
    slab = params["slab"]

    def full_spec(shape):
        return pl.BlockSpec(shape, lambda i: (0, 0))

    grid_spec = pltpu.PrefetchScalarGridSpec(
        num_scalar_prefetch=0,
        grid=(1,),  # whole (tiny) problem in a single program
        in_specs=[
            full_spec(x1.shape),
            full_spec(x2.shape),
            full_spec(slab.shape),
        ],
        out_specs=full_spec((bsz, d)),
    )

    return pl.pallas_call(
        _mamba_kernel,
        out_shape=jax.ShapeDtypeStruct((bsz, d), jnp.float32),
        grid_spec=grid_spec,
        compiler_params=pltpu.CompilerParams(
            dimension_semantics=("arbitrary",)),
    )(x1, x2, slab)


def make_params():
    d, n, k, dtr = D_MODEL, D_STATE, D_CONV, DT_RANK
    key = jax.random.PRNGKey(0)
    ks = jax.random.split(key, 8)

    def init(kk, shape, fan_in):
        return jax.random.normal(kk, shape, jnp.float32) / jnp.sqrt(fan_in)

    # PyTorch Linear weight is (out, in); kept here in the transposed (in, out) form.
    w_in = init(ks[0], (d, 2 * d), d)             # in_proj
    w_xp = init(ks[1], (d, dtr + 2 * n), d)       # x_proj
    w_dt = init(ks[2], (dtr, d), dtr)             # dt_proj weight
    b_dt = init(ks[3], (1, d), dtr)               # dt_proj bias
    w_out = init(ks[4], (d, d), d)                # out_proj
    conv_w = init(ks[5], (k, d), k)               # Conv1d depthwise weight (d,1,k) -> (k,d)
    conv_b = init(ks[6], (1, d), k)
    norm_w = jnp.ones((1, d), jnp.float32)
    a_log_t = jnp.broadcast_to(
        jnp.log(jnp.arange(1, n + 1, dtype=jnp.float32))[:, None], (n, d))
    d_param = jnp.ones((1, d), jnp.float32)

    # ---- kernel-friendly repack (pure parameter transforms, same math) ----
    w_dlt = w_xp[:, :dtr] @ w_dt                  # fuse x_proj delta slice with dt_proj
    w_bc_T = w_xp[:, dtr:].T                      # (2n, d): B columns^T then C columns^T
    cw = jnp.cumsum(conv_w[::-1, :], axis=0)      # cw[r] = sum of the last (r+1) conv taps
    neg_a_t = -jnp.exp(a_log_t)                   # (n, d) = A^T, A = -exp(A_log)

    # Single lane-dense slab (d + 32, 4d) = (64, 128):
    #   rows 0..d-1     cols [0:2d)=in_proj, [2d:3d)=fused delta weight, [3d:4d)=out_proj
    #   rows d..d+15    cols [0:d) = [norm_w, conv_b, dt_bias, D, cw (K), -A^T (n)]
    #   rows d+16..d+31 cols [0:d) = transposed B/C projection columns
    top = jnp.concatenate([w_in, w_dlt, w_out], axis=1)                        # (d, 4d)
    smalls = jnp.concatenate(
        [norm_w, conv_b, b_dt, d_param, cw, neg_a_t], axis=0)                  # (4+k+n, d) = (16, d)
    width = 4 * d
    mid = jnp.pad(smalls, ((0, 0), (0, width - d)))                            # (16, 4d)
    bot = jnp.pad(w_bc_T, ((0, 0), (0, width - d)))                            # (16, 4d)
    slab = jnp.concatenate([top, mid, bot], axis=0)                            # (64, 128)

    return dict(slab=slab)


if __name__ == "__main__":
    b, d = 2, D_MODEL
    key = jax.random.PRNGKey(0)
    k1, k2 = jax.random.split(key)
    x1 = jax.random.normal(k1, (b, d), jnp.float32)
    x2 = jax.random.normal(k2, (b, d), jnp.float32)

    params = make_params()
    fn = jax.jit(mamba_block)
    out = fn(x1, x2, params)
    jax.block_until_ready(out)
    assert out.shape == (b, d)
    print("KERNEL_OK")
</pallas_src>

<mosaic_0001>
module attributes {stable_mosaic.version = 11 : i64} {
  func.func @_mamba_kernel(%arg0: i32, %arg1: memref<2x32xf32, #tpu.memory_space<vmem>>, %arg2: memref<2x32xf32, #tpu.memory_space<vmem>>, %arg3: memref<64x128xf32, #tpu.memory_space<vmem>>, %arg4: memref<2x32xf32, #tpu.memory_space<vmem>>) attributes {dimension_semantics = [#tpu.dimension_semantics<arbitrary>], iteration_bounds = array<i64: 1>, scalar_prefetch = 0 : i64, scratch_operands = 0 : i64, tpu.core_type = #tpu.core_type<tc>, window_params = [{pipeline_mode = #tpu.pipeline_mode<synchronous>, transform_indices = @transform_0, window_bounds = array<i64: 2, 32>}, {pipeline_mode = #tpu.pipeline_mode<synchronous>, transform_indices = @transform_1, window_bounds = array<i64: 2, 32>}, {pipeline_mode = #tpu.pipeline_mode<synchronous>, transform_indices = @transform_2, window_bounds = array<i64: 64, 128>}, {pipeline_mode = #tpu.pipeline_mode<synchronous>, transform_indices = @transform_3, window_bounds = array<i64: 2, 32>}]} {
    %c0 = arith.constant 0 : index
    %c0_0 = arith.constant 0 : index
    %0 = vector.load %arg3[%c0, %c0_0] : memref<64x128xf32, #tpu.memory_space<vmem>>, vector<32x128xf32>
    %1 = vector.extract_strided_slice %0 {offsets = [0, 0], sizes = [32, 64], strides = [1, 1]} : vector<32x128xf32> to vector<32x64xf32>
    %2 = vector.extract_strided_slice %0 {offsets = [0, 64], sizes = [32, 32], strides = [1, 1]} : vector<32x128xf32> to vector<32x32xf32>
    %3 = vector.extract_strided_slice %0 {offsets = [0, 96], sizes = [32, 32], strides = [1, 1]} : vector<32x128xf32> to vector<32x32xf32>
    %c32 = arith.constant 32 : index
    %c0_1 = arith.constant 0 : index
    %4 = vector.load %arg3[%c32, %c0_1] : memref<64x128xf32, #tpu.memory_space<vmem>>, vector<16x32xf32>
    %5 = vector.extract_strided_slice %4 {offsets = [0, 0], sizes = [1, 32], strides = [1, 1]} : vector<16x32xf32> to vector<1x32xf32>
    %6 = vector.extract_strided_slice %4 {offsets = [1, 0], sizes = [1, 32], strides = [1, 1]} : vector<16x32xf32> to vector<1x32xf32>
    %7 = vector.extract_strided_slice %4 {offsets = [2, 0], sizes = [1, 32], strides = [1, 1]} : vector<16x32xf32> to vector<1x32xf32>
    %8 = vector.extract_strided_slice %4 {offsets = [3, 0], sizes = [1, 32], strides = [1, 1]} : vector<16x32xf32> to vector<1x32xf32>
    %9 = vector.extract_strided_slice %4 {offsets = [4, 0], sizes = [4, 32], strides = [1, 1]} : vector<16x32xf32> to vector<4x32xf32>
    %10 = vector.extract_strided_slice %4 {offsets = [8, 0], sizes = [8, 32], strides = [1, 1]} : vector<16x32xf32> to vector<8x32xf32>
    %c48 = arith.constant 48 : index
    %c0_2 = arith.constant 0 : index
    %11 = vector.load %arg3[%c48, %c0_2] : memref<64x128xf32, #tpu.memory_space<vmem>>, vector<16x32xf32>
    %c0_3 = arith.constant 0 : index
    %c0_4 = arith.constant 0 : index
    %12 = vector.load %arg1[%c0_3, %c0_4] : memref<2x32xf32, #tpu.memory_space<vmem>>, vector<2x32xf32>
    %c0_5 = arith.constant 0 : index
    %c0_6 = arith.constant 0 : index
    %13 = vector.load %arg2[%c0_5, %c0_6] : memref<2x32xf32, #tpu.memory_space<vmem>>, vector<2x32xf32>
    %14 = tpu.concatenate %12, %13 in 0 : vector<2x32xf32>, vector<2x32xf32> -> vector<4x32xf32>
    %15 = arith.mulf %14, %14 : vector<4x32xf32>
    %cst = arith.constant dense<0.000000e+00> : vector<4xf32>
    %16 = vector.multi_reduction <add>, %15, %cst [1] : vector<4x32xf32> to vector<4xf32>
    %17 = vector.shape_cast %16 : vector<4xf32> to vector<4x1xf32>
    %cst_7 = arith.constant 3.200000e+01 : f32
    %18 = vector.broadcast %cst_7 : f32 to vector<4x1xf32>
    %19 = arith.divf %17, %18 : vector<4x1xf32>
    %cst_8 = arith.constant 9.99999974E-6 : f32
    %20 = vector.broadcast %cst_8 : f32 to vector<4x1xf32>
    %21 = arith.addf %19, %20 : vector<4x1xf32>
    %22 = math.rsqrt %21 : vector<4x1xf32>
    %23 = vector.broadcast %22 : vector<4x1xf32> to vector<4x32xf32>
    %24 = arith.mulf %14, %23 : vector<4x32xf32>
    %25 = vector.broadcast %5 : vector<1x32xf32> to vector<4x32xf32>
    %26 = arith.mulf %24, %25 : vector<4x32xf32>
    %cst_9 = arith.constant dense<0.000000e+00> : vector<4x64xf32>
    %27 = tpu.matmul %26, %1, %cst_9 {dimension_numbers = #tpu.dot_dimension_numbers<[1], [0], [0], [1], [0, 0, 1, 1], [], []>} : vector<4x32xf32>, vector<32x64xf32>, vector<4x64xf32> -> vector<4x64xf32>
    %28 = vector.extract_strided_slice %27 {offsets = [0, 0], sizes = [2, 32], strides = [1, 1]} : vector<4x64xf32> to vector<2x32xf32>
    %29 = vector.extract_strided_slice %27 {offsets = [2, 0], sizes = [2, 32], strides = [1, 1]} : vector<4x64xf32> to vector<2x32xf32>
    %30 = vector.extract_strided_slice %27 {offsets = [0, 32], sizes = [2, 32], strides = [1, 1]} : vector<4x64xf32> to vector<2x32xf32>
    %31 = vector.extract_strided_slice %9 {offsets = [0, 0], sizes = [1, 32], strides = [1, 1]} : vector<4x32xf32> to vector<1x32xf32>
    %32 = vector.broadcast %31 : vector<1x32xf32> to vector<2x32xf32>
    %33 = arith.mulf %32, %28 : vector<2x32xf32>
    %34 = vector.broadcast %6 : vector<1x32xf32> to vector<2x32xf32>
    %35 = arith.addf %34, %33 : vector<2x32xf32>
    %36 = vector.extract_strided_slice %9 {offsets = [1, 0], sizes = [1, 32], strides = [1, 1]} : vector<4x32xf32> to vector<1x32xf32>
    %37 = vector.broadcast %36 : vector<1x32xf32> to vector<2x32xf32>
    %38 = arith.mulf %37, %28 : vector<2x32xf32>
    %39 = vector.broadcast %6 : vector<1x32xf32> to vector<2x32xf32>
    %40 = arith.addf %39, %38 : vector<2x32xf32>
    %41 = vector.extract_strided_slice %9 {offsets = [2, 0], sizes = [1, 32], strides = [1, 1]} : vector<4x32xf32> to vector<1x32xf32>
    %42 = vector.broadcast %41 : vector<1x32xf32> to vector<2x32xf32>
    %43 = arith.mulf %42, %28 : vector<2x32xf32>
    %44 = vector.broadcast %6 : vector<1x32xf32> to vector<2x32xf32>
    %45 = arith.addf %44, %43 : vector<2x32xf32>
    %46 = vector.extract_strided_slice %9 {offsets = [3, 0], sizes = [1, 32], strides = [1, 1]} : vector<4x32xf32> to vector<1x32xf32>
    %47 = vector.broadcast %46 : vector<1x32xf32> to vector<2x32xf32>
    %48 = arith.mulf %47, %28 : vector<2x32xf32>
    %49 = vector.broadcast %6 : vector<1x32xf32> to vector<2x32xf32>
    %50 = arith.addf %49, %48 : vector<2x32xf32>
    %51 = vector.extract_strided_slice %9 {offsets = [0, 0], sizes = [1, 32], strides = [1, 1]} : vector<4x32xf32> to vector<1x32xf32>
    %52 = vector.broadcast %51 : vector<1x32xf32> to vector<2x32xf32>
    %53 = arith.mulf %52, %29 : vector<2x32xf32>
    %54 = vector.broadcast %6 : vector<1x32xf32> to vector<2x32xf32>
    %55 = arith.addf %54, %53 : vector<2x32xf32>
    %56 = vector.extract_strided_slice %9 {offsets = [1, 0], sizes = [1, 32], strides = [1, 1]} : vector<4x32xf32> to vector<1x32xf32>
    %57 = vector.broadcast %56 : vector<1x32xf32> to vector<2x32xf32>
    %58 = arith.mulf %57, %29 : vector<2x32xf32>
    %59 = vector.broadcast %6 : vector<1x32xf32> to vector<2x32xf32>
    %60 = arith.addf %59, %58 : vector<2x32xf32>
    %61 = vector.extract_strided_slice %9 {offsets = [2, 0], sizes = [1, 32], strides = [1, 1]} : vector<4x32xf32> to vector<1x32xf32>
    %62 = vector.broadcast %61 : vector<1x32xf32> to vector<2x32xf32>
    %63 = arith.mulf %62, %29 : vector<2x32xf32>
    %64 = vector.broadcast %6 : vector<1x32xf32> to vector<2x32xf32>
    %65 = arith.addf %64, %63 : vector<2x32xf32>
    %66 = vector.extract_strided_slice %9 {offsets = [3, 0], sizes = [1, 32], strides = [1, 1]} : vector<4x32xf32> to vector<1x32xf32>
    %67 = vector.broadcast %66 : vector<1x32xf32> to vector<2x32xf32>
    %68 = arith.mulf %67, %29 : vector<2x32xf32>
    %69 = vector.broadcast %6 : vector<1x32xf32> to vector<2x32xf32>
    %70 = arith.addf %69, %68 : vector<2x32xf32>
    %71 = tpu.concatenate %35, %40, %45, %50, %55, %60, %65, %70 in 0 : vector<2x32xf32>, vector<2x32xf32>, vector<2x32xf32>, vector<2x32xf32>, vector<2x32xf32>, vector<2x32xf32>, vector<2x32xf32>, vector<2x32xf32> -> vector<16x32xf32>
    %72 = arith.negf %71 : vector<16x32xf32>
    %73 = math.exp %72 : vector<16x32xf32>
    %cst_10 = arith.constant 1.000000e+00 : f32
    %74 = vector.broadcast %cst_10 : f32 to vector<16x32xf32>
    %75 = arith.addf %74, %73 : vector<16x32xf32>
    %76 = arith.divf %74, %75 : vector<16x32xf32>
    %77 = arith.mulf %71, %76 : vector<16x32xf32>
    %78 = vector.extract_strided_slice %77 {offsets = [0, 0], sizes = [8, 32], strides = [1, 1]} : vector<16x32xf32> to vector<8x32xf32>
    %79 = vector.extract_strided_slice %77 {offsets = [8, 0], sizes = [8, 32], strides = [1, 1]} : vector<16x32xf32> to vector<8x32xf32>
    %cst_11 = arith.constant dense<0.000000e+00> : vector<8x32xf32>
    %80 = tpu.matmul %79, %2, %cst_11 {dimension_numbers = #tpu.dot_dimension_numbers<[1], [0], [0], [1], [0, 0, 1, 1], [], []>} : vector<8x32xf32>, vector<32x32xf32>, vector<8x32xf32> -> vector<8x32xf32>
    %81 = vector.broadcast %7 : vector<1x32xf32> to vector<8x32xf32>
    %82 = arith.addf %80, %81 : vector<8x32xf32>
    %cst_12 = arith.constant 0.000000e+00 : f32
    %83 = vector.broadcast %cst_12 : f32 to vector<8x32xf32>
    %84 = arith.maximumf %82, %83 : vector<8x32xf32>
    %85 = vector.broadcast %cst_12 : f32 to vector<8x32xf32>
    %86 = arith.subf %82, %85 : vector<8x32xf32>
    %87 = arith.cmpf one, %86, %86 : vector<8x32xf32>
    %88 = vector.broadcast %cst_12 : f32 to vector<8x32xf32>
    %89 = arith.addf %82, %88 : vector<8x32xf32>
    %90 = math.absf %86 : vector<8x32xf32>
    %cst_13 = arith.constant 0.000000e+00 : f32
    %91 = vector.broadcast %cst_13 : f32 to vector<8x32xf32>
    %92 = arith.subf %91, %90 : vector<8x32xf32>
    %93 = math.exp %92 : vector<8x32xf32>
    %94 = math.log1p %93 : vector<8x32xf32>
    %95 = arith.addf %84, %94 : vector<8x32xf32>
    %96 = arith.select %87, %89, %95 : vector<8x32xi1>, vector<8x32xf32>
    %97 = arith.mulf %96, %78 : vector<8x32xf32>
    %cst_14 = arith.constant dense<0.000000e+00> : vector<16x8xf32>
    %98 = tpu.matmul %11, %79, %cst_14 {dimension_numbers = #tpu.dot_dimension_numbers<[1], [1], [0], [0], [0, 0, 1, 0], [], []>} : vector<16x32xf32>, vector<8x32xf32>, vector<16x8xf32> -> vector<16x8xf32>
    %99 = vector.extract_strided_slice %98 {offsets = [0, 0], sizes = [8, 1], strides = [1, 1]} : vector<16x8xf32> to vector<8x1xf32>
    %100 = vector.extract_strided_slice %97 {offsets = [0, 0], sizes = [1, 32], strides = [1, 1]} : vector<8x32xf32> to vector<1x32xf32>
    %101 = vector.broadcast %99 : vector<8x1xf32> to vector<8x32xf32>
    %102 = vector.broadcast %100 : vector<1x32xf32> to vector<8x32xf32>
    %103 = arith.mulf %101, %102 : vector<8x32xf32>
    %104 = vector.extract_strided_slice %96 {offsets = [2, 0], sizes = [1, 32], strides = [1, 1]} : vector<8x32xf32> to vector<1x32xf32>
    %105 = vector.broadcast %104 : vector<1x32xf32> to vector<8x32xf32>
    %106 = arith.mulf %10, %105 : vector<8x32xf32>
    %107 = math.exp %106 : vector<8x32xf32>
    %108 = arith.mulf %107, %103 : vector<8x32xf32>
    %109 = vector.extract_strided_slice %98 {offsets = [0, 2], sizes = [8, 1], strides = [1, 1]} : vector<16x8xf32> to vector<8x1xf32>
    %110 = vector.extract_strided_slice %97 {offsets = [2, 0], sizes = [1, 32], strides = [1, 1]} : vector<8x32xf32> to vector<1x32xf32>
    %111 = vector.broadcast %109 : vector<8x1xf32> to vector<8x32xf32>
    %112 = vector.broadcast %110 : vector<1x32xf32> to vector<8x32xf32>
    %113 = arith.mulf %111, %112 : vector<8x32xf32>
    %114 = arith.addf %108, %113 : vector<8x32xf32>
    %115 = vector.extract_strided_slice %96 {offsets = [4, 0], sizes = [1, 32], strides = [1, 1]} : vector<8x32xf32> to vector<1x32xf32>
    %116 = vector.broadcast %115 : vector<1x32xf32> to vector<8x32xf32>
    %117 = arith.mulf %10, %116 : vector<8x32xf32>
    %118 = math.exp %117 : vector<8x32xf32>
    %119 = arith.mulf %118, %114 : vector<8x32xf32>
    %120 = vector.extract_strided_slice %98 {offsets = [0, 4], sizes = [8, 1], strides = [1, 1]} : vector<16x8xf32> to vector<8x1xf32>
    %121 = vector.extract_strided_slice %97 {offsets = [4, 0], sizes = [1, 32], strides = [1, 1]} : vector<8x32xf32> to vector<1x32xf32>
    %122 = vector.broadcast %120 : vector<8x1xf32> to vector<8x32xf32>
    %123 = vector.broadcast %121 : vector<1x32xf32> to vector<8x32xf32>
    %124 = arith.mulf %122, %123 : vector<8x32xf32>
    %125 = arith.addf %119, %124 : vector<8x32xf32>
    %126 = vector.extract_strided_slice %96 {offsets = [6, 0], sizes = [1, 32], strides = [1, 1]} : vector<8x32xf32> to vector<1x32xf32>
    %127 = vector.broadcast %126 : vector<1x32xf32> to vector<8x32xf32>
    %128 = arith.mulf %10, %127 : vector<8x32xf32>
    %129 = math.exp %128 : vector<8x32xf32>
    %130 = vector.extract_strided_slice %98 {offsets = [0, 6], sizes = [8, 1], strides = [1, 1]} : vector<16x8xf32> to vector<8x1xf32>
    %131 = vector.extract_strided_slice %97 {offsets = [6, 0], sizes = [1, 32], strides = [1, 1]} : vector<8x32xf32> to vector<1x32xf32>
    %132 = vector.broadcast %130 : vector<8x1xf32> to vector<8x32xf32>
    %133 = vector.broadcast %131 : vector<1x32xf32> to vector<8x32xf32>
    %134 = arith.mulf %132, %133 : vector<8x32xf32>
    %135 = arith.mulf %129, %129 : vector<8x32xf32>
    %136 = arith.mulf %129, %134 : vector<8x32xf32>
    %137 = arith.addf %136, %134 : vector<8x32xf32>
    %138 = arith.mulf %135, %135 : vector<8x32xf32>
    %139 = arith.mulf %135, %137 : vector<8x32xf32>
    %140 = arith.addf %139, %137 : vector<8x32xf32>
    %141 = arith.mulf %129, %138 : vector<8x32xf32>
    %142 = arith.mulf %129, %140 : vector<8x32xf32>
    %143 = arith.addf %142, %134 : vector<8x32xf32>
    %144 = arith.mulf %141, %125 : vector<8x32xf32>
    %145 = arith.addf %144, %143 : vector<8x32xf32>
    %146 = vector.extract_strided_slice %98 {offsets = [8, 6], sizes = [8, 1], strides = [1, 1]} : vector<16x8xf32> to vector<8x1xf32>
    %147 = vector.broadcast %146 : vector<8x1xf32> to vector<8x32xf32>
    %148 = arith.mulf %145, %147 : vector<8x32xf32>
    %cst_15 = arith.constant dense<0.000000e+00> : vector<32xf32>
    %149 = vector.multi_reduction <add>, %148, %cst_15 [0] : vector<8x32xf32> to vector<32xf32>
    %150 = vector.shape_cast %149 : vector<32xf32> to vector<1x32xf32>
    %151 = vector.extract_strided_slice %78 {offsets = [6, 0], sizes = [1, 32], strides = [1, 1]} : vector<8x32xf32> to vector<1x32xf32>
    %152 = arith.mulf %151, %8 : vector<1x32xf32>
    %153 = arith.addf %150, %152 : vector<1x32xf32>
    %154 = vector.extract_strided_slice %98 {offsets = [0, 1], sizes = [8, 1], strides = [1, 1]} : vector<16x8xf32> to vector<8x1xf32>
    %155 = vector.extract_strided_slice %97 {offsets = [1, 0], sizes = [1, 32], strides = [1, 1]} : vector<8x32xf32> to vector<1x32xf32>
    %156 = vector.broadcast %154 : vector<8x1xf32> to vector<8x32xf32>
    %157 = vector.broadcast %155 : vector<1x32xf32> to vector<8x32xf32>
    %158 = arith.mulf %156, %157 : vector<8x32xf32>
    %159 = vector.extract_strided_slice %96 {offsets = [3, 0], sizes = [1, 32], strides = [1, 1]} : vector<8x32xf32> to vector<1x32xf32>
    %160 = vector.broadcast %159 : vector<1x32xf32> to vector<8x32xf32>
    %161 = arith.mulf %10, %160 : vector<8x32xf32>
    %162 = math.exp %161 : vector<8x32xf32>
    %163 = arith.mulf %162, %158 : vector<8x32xf32>
    %164 = vector.extract_strided_slice %98 {offsets = [0, 3], sizes = [8, 1], strides = [1, 1]} : vector<16x8xf32> to vector<8x1xf32>
    %165 = vector.extract_strided_slice %97 {offsets = [3, 0], sizes = [1, 32], strides = [1, 1]} : vector<8x32xf32> to vector<1x32xf32>
    %166 = vector.broadcast %164 : vector<8x1xf32> to vector<8x32xf32>
    %167 = vector.broadcast %165 : vector<1x32xf32> to vector<8x32xf32>
    %168 = arith.mulf %166, %167 : vector<8x32xf32>
    %169 = arith.addf %163, %168 : vector<8x32xf32>
    %170 = vector.extract_strided_slice %96 {offsets = [5, 0], sizes = [1, 32], strides = [1, 1]} : vector<8x32xf32> to vector<1x32xf32>
    %171 = vector.broadcast %170 : vector<1x32xf32> to vector<8x32xf32>
    %172 = arith.mulf %10, %171 : vector<8x32xf32>
    %173 = math.exp %172 : vector<8x32xf32>
    %174 = arith.mulf %173, %169 : vector<8x32xf32>
    %175 = vector.extract_strided_slice %98 {offsets = [0, 5], sizes = [8, 1], strides = [1, 1]} : vector<16x8xf32> to vector<8x1xf32>
    %176 = vector.extract_strided_slice %97 {offsets = [5, 0], sizes = [1, 32], strides = [1, 1]} : vector<8x32xf32> to vector<1x32xf32>
    %177 = vector.broadcast %175 : vector<8x1xf32> to vector<8x32xf32>
    %178 = vector.broadcast %176 : vector<1x32xf32> to vector<8x32xf32>
    %179 = arith.mulf %177, %178 : vector<8x32xf32>
    %180 = arith.addf %174, %179 : vector<8x32xf32>
    %181 = vector.extract_strided_slice %96 {offsets = [7, 0], sizes = [1, 32], strides = [1, 1]} : vector<8x32xf32> to vector<1x32xf32>
    %182 = vector.broadcast %181 : vector<1x32xf32> to vector<8x32xf32>
    %183 = arith.mulf %10, %182 : vector<8x32xf32>
    %184 = math.exp %183 : vector<8x32xf32>
    %185 = vector.extract_strided_slice %98 {offsets = [0, 7], sizes = [8, 1], strides = [1, 1]} : vector<16x8xf32> to vector<8x1xf32>
    %186 = vector.extract_strided_slice %97 {offsets = [7, 0], sizes = [1, 32], strides = [1, 1]} : vector<8x32xf32> to vector<1x32xf32>
    %187 = vector.broadcast %185 : vector<8x1xf32> to vector<8x32xf32>
    %188 = vector.broadcast %186 : vector<1x32xf32> to vector<8x32xf32>
    %189 = arith.mulf %187, %188 : vector<8x32xf32>
    %190 = arith.mulf %184, %184 : vector<8x32xf32>
    %191 = arith.mulf %184, %189 : vector<8x32xf32>
    %192 = arith.addf %191, %189 : vector<8x32xf32>
    %193 = arith.mulf %190, %190 : vector<8x32xf32>
    %194 = arith.mulf %190, %192 : vector<8x32xf32>
    %195 = arith.addf %194, %192 : vector<8x32xf32>
    %196 = arith.mulf %184, %193 : vector<8x32xf32>
    %197 = arith.mulf %184, %195 : vector<8x32xf32>
    %198 = arith.addf %197, %189 : vector<8x32xf32>
    %199 = arith.mulf %196, %180 : vector<8x32xf32>
    %200 = arith.addf %199, %198 : vector<8x32xf32>
    %201 = vector.extract_strided_slice %98 {offsets = [8, 7], sizes = [8, 1], strides = [1, 1]} : vector<16x8xf32> to vector<8x1xf32>
    %202 = vector.broadcast %201 : vector<8x1xf32> to vector<8x32xf32>
    %203 = arith.mulf %200, %202 : vector<8x32xf32>
    %cst_16 = arith.constant dense<0.000000e+00> : vector<32xf32>
    %204 = vector.multi_reduction <add>, %203, %cst_16 [0] : vector<8x32xf32> to vector<32xf32>
    %205 = vector.shape_cast %204 : vector<32xf32> to vector<1x32xf32>
    %206 = vector.extract_strided_slice %78 {offsets = [7, 0], sizes = [1, 32], strides = [1, 1]} : vector<8x32xf32> to vector<1x32xf32>
    %207 = arith.mulf %206, %8 : vector<1x32xf32>
    %208 = arith.addf %205, %207 : vector<1x32xf32>
    %209 = tpu.concatenate %153, %208 in 0 : vector<1x32xf32>, vector<1x32xf32> -> vector<2x32xf32>
    %210 = arith.negf %30 : vector<2x32xf32>
    %211 = math.exp %210 : vector<2x32xf32>
    %cst_17 = arith.constant 1.000000e+00 : f32
    %212 = vector.broadcast %cst_17 : f32 to vector<2x32xf32>
    %213 = arith.addf %212, %211 : vector<2x32xf32>
    %214 = arith.divf %212, %213 : vector<2x32xf32>
    %215 = arith.mulf %30, %214 : vector<2x32xf32>
    %216 = arith.mulf %209, %215 : vector<2x32xf32>
    %cst_18 = arith.constant dense<0.000000e+00> : vector<2x32xf32>
    %217 = tpu.matmul %216, %3, %cst_18 {dimension_numbers = #tpu.dot_dimension_numbers<[1], [0], [0], [1], [0, 0, 1, 1], [], []>} : vector<2x32xf32>, vector<32x32xf32>, vector<2x32xf32> -> vector<2x32xf32>
    %218 = arith.mulf %217, %217 : vector<2x32xf32>
    %cst_19 = arith.constant dense<0.000000e+00> : vector<2xf32>
    %219 = vector.multi_reduction <add>, %218, %cst_19 [1] : vector<2x32xf32> to vector<2xf32>
    %220 = vector.shape_cast %219 : vector<2xf32> to vector<2x1xf32>
    %cst_20 = arith.constant 3.200000e+01 : f32
    %221 = vector.broadcast %cst_20 : f32 to vector<2x1xf32>
    %222 = arith.divf %220, %221 : vector<2x1xf32>
    %cst_21 = arith.constant 9.99999974E-6 : f32
    %223 = vector.broadcast %cst_21 : f32 to vector<2x1xf32>
    %224 = arith.addf %222, %223 : vector<2x1xf32>
    %225 = math.rsqrt %224 : vector<2x1xf32>
    %226 = vector.broadcast %225 : vector<2x1xf32> to vector<2x32xf32>
    %227 = arith.mulf %217, %226 : vector<2x32xf32>
    %228 = vector.broadcast %5 : vector<1x32xf32> to vector<2x32xf32>
    %229 = arith.mulf %227, %228 : vector<2x32xf32>
    %c0_22 = arith.constant 0 : index
    %c0_23 = arith.constant 0 : index
    %230 = vector.load %arg4[%c0_22, %c0_23] : memref<2x32xf32, #tpu.memory_space<vmem>>, vector<2x32xf32>
    tpu.vector_store %arg4[%c0_22, %c0_23], %229 {strides = array<i32>} : memref<2x32xf32, #tpu.memory_space<vmem>>, vector<2x32xf32>,
    return
  }
  func.func @transform_0(%arg0: i32) -> (i32, i32) {
    %c0_i32 = arith.constant 0 : i32
    %c0_i32_0 = arith.constant 0 : i32
    %c0_i32_1 = arith.constant 0 : i32
    return %c0_i32, %c0_i32_0 : i32, i32
  }
  func.func @transform_1(%arg0: i32) -> (i32, i32) {
    %c0_i32 = arith.constant 0 : i32
    %c0_i32_0 = arith.constant 0 : i32
    %c0_i32_1 = arith.constant 0 : i32
    return %c0_i32, %c0_i32_0 : i32, i32
  }
  func.func @transform_2(%arg0: i32) -> (i32, i32) {
    %c0_i32 = arith.constant 0 : i32
    %c0_i32_0 = arith.constant 0 : i32
    %c0_i32_1 = arith.constant 0 : i32
    return %c0_i32, %c0_i32_0 : i32, i32
  }
  func.func @transform_3(%arg0: i32) -> (i32, i32) {
    %c0_i32 = arith.constant 0 : i32
    %c0_i32_0 = arith.constant 0 : i32
    %c0_i32_1 = arith.constant 0 : i32
    return %c0_i32, %c0_i32_0 : i32, i32
  }
}

</mosaic_0001>

<bundles_post_ra>
// kernel: mamba_block.1
= control target key start
LH: loop header
LB: loop body
LE: loop exit
PB: predicated region body
PF: predicated region fallthrough
CT: control target
= control target key end

     0   :  { %8 = vsyncpa [#allocation3], 0  ;;  %s843_s0 = inlined_call_operand.hbm [shape: f32[2,32], index: 0, kind: input, shape index: {}]   ;;  %s844_s1 = inlined_call_operand.hbm [shape: f32[2,32], index: 1, kind: input, shape index: {}]   ;;  %s845_s2 = inlined_call_operand.hbm [shape: f32[64,128], index: 2, kind: input, shape index: {}]   ;;  %s846_s3 = inlined_call_operand.hbm [shape: f32[2,32], index: 3, kind: output, shape index: {}]  }
   0x1   :  { %9 = vsyncpa [#allocation6], 0  ;;  %s27_s14 = sshll.u32 %s844_s1, 4  ;;  %s28_s14 = int_to_ptr.hbm [resolvable:$true] %s27_s14 }
   0x2   :  { %10 = vsyncpa [#allocation4], 0  ;;  %s726_s15 = smov [#allocation5]   ;;  %s16_s19 = sshll.u32 %s843_s0, 4  ;;  %s17_s19 = int_to_ptr.hbm [resolvable:$true] %s16_s19 }
   0x3   :  { %s29_s16 = sshll.u32 %s726_s15, 4  ;;  %s727_s20 = smov [#allocation2]   ;;  %s30_s16 = int_to_ptr.vmem [resolvable:$true] %s29_s16 }
   0x4   :  { %32 = dma.hbm_to_vmem [thread:$0]  %s28_s14, 32, %s30_s16, [#allocation6]  }
   0x5   :  { %s18_s21 = sshll.u32 %s727_s20, 4  ;;  %s37_s24 = sshll.u32 %s845_s2, 4  ;;  %s19_s21 = int_to_ptr.vmem [resolvable:$true] %s18_s21  ;;  %s38_s24 = int_to_ptr.hbm [resolvable:$true] %s37_s24 }
   0x6   :  { %21 = dma.hbm_to_vmem [thread:$0]  %s17_s19, 32, %s19_s21, [#allocation3]  }
   0x7   :  { %s728_s1 = smov [#allocation7]   ;;  %s729_s26 = smov 128  }
   0x8   :  { %s39_s25 = sshll.u32 %s728_s1, 4  ;;  %s730_s27 = smov 8   ;;  %s40_s25 = int_to_ptr.vmem [resolvable:$true] %s39_s25 }
   0x9   :  { %45 = dma.hbm_to_vmem [thread:$0]  %s38_s24, 1024, %s40_s25, [#allocation6], %s729_s26, %s729_s26, %s730_s27  }
   0xa   :  { %720 = dma.done.wait [#allocation3], 32  }
   0xb   :  { %721 = vsyncadd [#allocation3], 4294967264 }
   0xc   :  { %722 = dma.done.wait [#allocation6], 1056  }
   0xd   :  { %723 = vsyncadd [#allocation6], 4294966240  ;;  %v66_v0 = vld [vmem:[#allocation2] sm:$0x3]  ;;  %v67_v1 = vld [vmem:[#allocation5] sm:$0x3] }
   0xe   :  { %vm71_vm0 = vcmask 1041408   ;;  %v69_v2 = vrot.slane %v67_v1, 6  ;;  %vm74_vm1 = vcmask 257024   ;;  %v731_v6 = vmov 32.0   ;;  %v61_v10 = vld [vmem:[#allocation7 + $0x18] sm:$0xff]  ;;  %v60_v11 = vld [vmem:[#allocation7 + $0x10] sm:$0xff] }
   0xf   :  { %590 = vrcp.f32 %v731_v6  ;;  %116 = vmatpush.msra.mxu0 %v61_v10  ;;  %v59_v12 = vld [vmem:[#allocation7 + $0x8] sm:$0xff]  ;;  %v58_v14 = vld [vmem:[#allocation7] sm:$0xff]  ;;  %v774_v16 = vpack.i.bf16 %v60_v11, %v61_v10  ;;  %s732_s0 = smov 64   ;;  %vm100_vm6 = vcmask 261120   ;;  %vm154_vm7 = vcmask 1043456   ;;  %s736_s2 = smov 96  }
  0x10   :  { %v72_v3 = vsel %vm71_vm0, %v66_v0, %v69_v2  ;;  %v776_v17 = vpack.i.bf16 %v58_v14, %v59_v12  ;;  %v783_v27 = vld [vmem:[#allocation7 + $0x20] sm:$0xff]  ;;  %vm156_vm8 = vcmask 1045504   ;;  %s742_s28 = smov 32   ;;  %s743_s29 = smov [#allocation8]  }
  0x11   :  { %v73_v4 = vmul.f32 %v72_v3, %v72_v3  ;;  %117 = vmatpush.msra.mxu0 %v60_v11  ;;  %v98_v29 = vperm.slane %v783_v27, 0  ;;  %v124_v39 = vperm.slane %v783_v27, 4  ;;  %v128_v40 = vperm.slane %v783_v27, 5  ;;  %s519_s30 = sshll.u32 %s743_s29, 4  ;;  %s521_s6 = sshll.u32 %s846_s3, 4  ;;  %s520_s30 = int_to_ptr.vmem [resolvable:$true] %s519_s30  ;;  %s522_s6 = int_to_ptr.hbm [resolvable:$true] %s521_s6 }
  0x12   :  { %565 = vrot.lane.b32.xlu1 %v776_v17, %s732_s0  ;;  %v131_v41 = vperm.slane %v783_v27, 6  ;;  %v134_v42 = vperm.slane %v783_v27, 7  ;;  %v126_v43 = vperm.slane %v783_v27, 1 }
  0x13   :  { %v75_v5 = vsel %vm74_vm1, %v73_v4, 0.0  ;;  %118 = vmatpush.msra.mxu0 %v59_v12 }
  0x14   :  { %76 = vadd.xlane.f32.xlu0 %v75_v5 }
  0x15   :  { %v591_v7 = vpop.eup %590  ;;  %119 = vmatpush.msra.mxu0 %v58_v14 }
  0x16   :  { %v79_v8 = vmul.f32 32.0, %v591_v7  ;;  %vm83_vm2 = vweird.f32 %v591_v7 }
  0x18   :  { %v80_v9 = vsub.f32 1.0, %v79_v8 }
  0x1a   :  { %v81_v13 = vmul.f32 %v591_v7, %v80_v9 }
  0x1c   :  { %v82_v15 = vadd.f32 %v591_v7, %v81_v13 }
  0x1e   :  { %v780_v18 = vsel %vm83_vm2, %v591_v7, %v82_v15  ;;  %v64_v15 = vld [vmem:[#allocation7 + $0x30] sm:$0xff] }
  0x28   :  { %560 = vrot.lane.b32.xlu0 %v774_v16, %s732_s0 }
  0x84   :  { %v566_v34 = vpop.permute.xlu1 %565 }
  0x85   :  { %v567_v37 = vunpack.i.l.bf16 %v566_v34  ;;  %v568_v38 = vunpack.i.h.bf16 %v566_v34 }
  0x87   :  { %v77_v19 = vpop.xlane.xlu0 %76 }
  0x88   :  { %v85_v20 = vmul.f32 %v780_v18, %v77_v19  ;;  %v65_v19 = vld [vmem:[#allocation7 + $0x38] sm:$0xff] }
  0x8a   :  { %v86_v21 = vadd.f32 1e-05, %v85_v20 }
  0x8c   :  { %592 = vrsqrt.f32 %v86_v21  ;;  %vm93_vm4 = vweird.f32 %v86_v21 }
  0x92   :  { %v593_v22 = vpop.eup %592 }
  0x93   :  { %v88_v23 = vmul.f32 %v593_v22, %v86_v21  ;;  %vm94_vm3 = vweird.f32 %v593_v22 }
  0x94   :  { %vm95_vm5 = vmor %vm93_vm4, %vm94_vm3 }
  0x95   :  { %v89_v24 = vmul.f32 %v593_v22, %v88_v23  ;;  %v734_v23 = vmov 5  }
  0x96   :  { %576 = vset.pattern.permute.xlu0 %v734_v23 }
  0x97   :  { %v90_v25 = vmul.f32 0.5, %v89_v24  ;;  %v735_v24 = vmov 6  }
  0x98   :  { %569 = vset.pattern.permute.xlu1 %v735_v24 }
  0x99   :  { %v91_v26 = vsub.f32 1.5, %v90_v25 }
  0x9a   :  { %v561_v33 = vpop.permute.xlu0 %560 }
  0x9b   :  { %v92_v28 = vmul.f32 %v593_v22, %v91_v26  ;;  %v562_v35 = vunpack.i.l.bf16 %v561_v33  ;;  %v563_v36 = vunpack.i.h.bf16 %v561_v33 }
  0x9d   :  { %v96_v30 = vsel %vm95_vm5, %v593_v22, %v92_v28  ;;  %233 = vmatpush.msra.mxu1 %v562_v35  ;;  %v733_v22 = vmov 7  }
  0x9e   :  { %v97_v31 = vmul.f32 %v96_v30, %v72_v3  ;;  %570 = vset.pattern.permute.xlu2 %v733_v22 }
  0x9f   :  { %234 = vmatpush.msra.mxu1 %v563_v36 }
  0xa0   :  { %v99_v32 = vmul.f32 %v98_v29, %v97_v31 }
  0xa1   :  { %235 = vmatpush.msra.mxu1 %v567_v37 }
  0xa2   :  { %532 = vmatmul.msk.f32.vlgmr.msra.gmra.mxu0 %vm100_vm6, %v99_v32 }
  0xa3   :  { %236 = vmatpush.msra.mxu1 %v568_v38 }
 0x11f   :  { %v794_v44 = vpop.f32.mrf.mxu0 }
 0x120   :  { %v125_v45 = vmul.f32 %v124_v39, %v794_v44  ;;  %v129_v46 = vmul.f32 %v128_v40, %v794_v44  ;;  %v132_v47 = vmul.f32 %v131_v41, %v794_v44  ;;  %v135_v48 = vmul.f32 %v134_v42, %v794_v44 }
 0x121   :  { %v539_v20 = vmul.f32 -1.442695, %v794_v44  ;;  %v737_v40 = vmov 0   ;;  %v738_v41 = vmov 1   ;;  %v739_v42 = vmov 2  }
 0x122   :  { %v127_v49 = vadd.f32 %v126_v43, %v125_v45  ;;  %v130_v50 = vadd.f32 %v129_v46, %v126_v43  ;;  %v133_v51 = vadd.f32 %v132_v47, %v126_v43  ;;  %v136_v52 = vadd.f32 %v135_v48, %v126_v43 }
 0x123   :  { %v740_v43 = vmov 3   ;;  %v741_v46 = vmov 4  }
 0x124   :  { %v138_v53 = vrot.slane %v130_v50, 6  ;;  %v141_v54 = vrot.slane %v133_v51, 4  ;;  %v147_v55 = vrot.slane %v127_v49, 2  ;;  %v149_v56 = vrot.slane %v133_v51, 6 }
 0x125   :  { %v144_v57 = vrot.slane %v136_v52, 2  ;;  %v151_v58 = vrot.slane %v136_v52, 4 }
 0x126   :  { %v153_v59 = vsel %vm71_vm0, %v127_v49, %v138_v53  ;;  %v158_v60 = vsel %vm71_vm0, %v147_v55, %v130_v50 }
 0x127   :  { %v155_v61 = vsel %vm154_vm7, %v153_v59, %v141_v54  ;;  %v159_v62 = vsel %vm154_vm7, %v158_v60, %v149_v56 }
 0x128   :  { %v802_v63 = vsel %vm156_vm8, %v155_v61, %v144_v57  ;;  %v160_v0 = vsel %vm156_vm8, %v159_v62, %v151_v58  ;;  %vm432_vm8 = vcmask 1040384  }
 0x129   :  { %v534_v1 = vmul.f32 -1.442695, %v160_v0  ;;  %v533_v52 = vmul.f32 -1.442695, %v802_v63 }
 0x12b   :  { %594 = vpow2.f32 %v534_v1 }
 0x131   :  { %v595_v2 = vpop.eup %594 }
 0x132   :  { %v168_v3 = vadd.f32 1.0, %v595_v2 }
 0x134   :  { %596 = vrcp.f32 %v168_v3  ;;  %v195_v7 = vand.u32 2147483648, %v168_v3  ;;  %v193_v9 = vand.u32 2147483647, %v168_v3  ;;  %vm189_vm10 = vweird.f32 %v168_v3 }
 0x135   :  { %598 = vpow2.f32 %v539_v20 }
 0x136   :  { %v196_v11 = vor.u32 1.1754944e-38, %v195_v7  ;;  %vm194_vm12 = vcmp.eq.f32.partialorder %v193_v9, 8.507059e+37 }
 0x13a   :  { %v597_v4 = vpop.eup %596 }
 0x13b   :  { %v185_v5 = vmul.f32 %v597_v4, %v168_v3  ;;  %vm190_vm9 = vweird.f32 %v597_v4  ;;  %v599_v21 = vpop.eup %598 }
 0x13c   :  { %vm191_vm11 = vmor %vm189_vm10, %vm190_vm9  ;;  %v437_v25 = vadd.f32 1.0, %v599_v21  ;;  %vm495_vm9 = vcmask 254976  }
 0x13d   :  { %v186_v6 = vsub.f32 1.0, %v185_v5 }
 0x13e   :  { %600 = vrcp.f32 %v437_v25  ;;  %v449_v33 = vand.u32 2147483648, %v437_v25  ;;  %vm443_vm14 = vweird.f32 %v437_v25  ;;  %v447_v34 = vand.u32 2147483647, %v437_v25 }
 0x13f   :  { %v187_v8 = vmul.f32 %v597_v4, %v186_v6 }
 0x140   :  { %v450_v37 = vor.u32 1.1754944e-38, %v449_v33  ;;  %vm448_vm0 = vcmp.eq.f32.partialorder %v447_v34, 8.507059e+37 }
 0x141   :  { %v188_v10 = vadd.f32 %v597_v4, %v187_v8 }
 0x143   :  { %v192_v12 = vsel %vm191_vm11, %v597_v4, %v188_v10 }
 0x144   :  { %v197_v13 = vsel %vm194_vm12, %v196_v11, %v192_v12  ;;  %v601_v26 = vpop.eup %600  ;;  %v63_v11 = vld [vmem:[#allocation7 + $0x28] sm:$0xff] }
 0x145   :  { %v200_v14 = vmul.f32 %v197_v13, %v160_v0  ;;  %v439_v28 = vmul.f32 %v601_v26, %v437_v25  ;;  %vm444_vm13 = vweird.f32 %v601_v26 }
 0x146   :  { %vm445_vm15 = vmor %vm443_vm14, %vm444_vm13 }
 0x147   :  { %535 = vmatmul.msk.f32.vlgmr.msra.gmra.mxu1 %vm100_vm6, %v200_v14  ;;  %536 = vmatpush.xpose.msk.msra.mxu2 %vm100_vm6, %v200_v14  ;;  %v440_v30 = vsub.f32 1.0, %v439_v28 }
 0x149   :  { %v441_v31 = vmul.f32 %v601_v26, %v440_v30 }
 0x14a   :  { %537 = vmatmul.msk.f32.vlgmr.msra.gmra.mxu2 %vm100_vm6, %v64_v15 }
 0x14b   :  { %v442_v32 = vadd.f32 %v601_v26, %v441_v31 }
 0x14d   :  { %v446_v36 = vsel %vm445_vm15, %v601_v26, %v442_v32 }
 0x14e   :  { %v451_v38 = vsel %vm448_vm0, %v450_v37, %v446_v36 }
 0x14f   :  { %v453_v39 = vmul.f32 %v451_v38, %v794_v44  ;;  %v201_v44 = vperm.slane %v783_v27, 2 }
 0x152   :  { %538 = vmatmul.msk.f32.gmra.mxu2 %vm100_vm6, %v65_v19 }
 0x1c4   :  { %v238_v47 = vpop.f32.mrf.mxu1 }
 0x1c5   :  { %v239_v48 = vadd.f32 %v238_v47, %v201_v44 }
 0x1c7   :  { %v244_v49 = vand.u32 2147483647, %v239_v48  ;;  %v241_v2 = vmax.f32 %v239_v48, 0.0  ;;  %vm242_vm2 = vcmp.ne.f32.partialorder %v239_v48, %v239_v48 }
 0x1c9   :  { %v245_v50 = vsub.f32 0.0, %v244_v49 }
 0x1cb   :  { %v246_v51 = vmul.f32 1.442695, %v245_v50 }
 0x1cd   :  { %v283_v35 = vpop.f32.mrf.mxu2  ;;  %602 = vpow2.f32 %v246_v51 }
 0x1ce   :  { %383 = vperm.xlu0 %576, %v283_v35   ;;  %394 = vperm.xlu2 %570, %v283_v35   ;;  %604 = vpow2.f32 %v533_v52 }
 0x1cf   :  { %325 = vperm.xlu1 %569, %v283_v35  }
 0x1d3   :  { %v603_v53 = vpop.eup %602 }
 0x1d4   :  { %v605_v54 = vpop.eup %604  ;;  %v248_v55 = vadd.f32 1.0, %v603_v53  ;;  %v254_v60 = vand.u32 2147483647, %v603_v53 }
 0x1d5   :  { %v286_v45 = vpop.f32.mrf.mxu2  ;;  %v167_v56 = vadd.f32 1.0, %v605_v54 }
 0x1d6   :  { %455 = vrot.lane.b32.xlu0 %v453_v39, %s736_s2  ;;  %571 = vset.pattern.permute.xlu2 %v737_v40  ;;  %606 = vlog2.f32 %v248_v55  ;;  %vm255_vm1 = vcmp.lt.f32.partialorder %v254_v60, 0.0004427343 }
 0x1d7   :  { %572 = vset.pattern.permute.xlu1 %v738_v41  ;;  %291 = vperm.xlu2 %571, %v283_v35   ;;  %608 = vrcp.f32 %v167_v56  ;;  %v180_v8 = vand.u32 2147483648, %v167_v56  ;;  %vm174_vm4 = vweird.f32 %v167_v56  ;;  %v178_v10 = vand.u32 2147483647, %v167_v56 }
 0x1d8   :  { %360 = vperm.xlu1 %572, %v283_v35   ;;  %589 = vset.pattern.permute.xlu0 %v733_v22 }
 0x1d9   :  { %v181_v13 = vor.u32 1.1754944e-38, %v180_v8  ;;  %vm179_vm7 = vcmp.eq.f32.partialorder %v178_v10, 8.507059e+37 }
 0x1dc   :  { %v607_v57 = vpop.eup %606 }
 0x1dd   :  { %v609_v58 = vpop.eup %608 }
 0x1de   :  { %v170_v61 = vmul.f32 %v609_v58, %v167_v56  ;;  %vm175_vm3 = vweird.f32 %v609_v58 }
 0x1df   :  { %573 = vset.pattern.permute.xlu2 %v739_v42  ;;  %vm176_vm5 = vmor %vm174_vm4, %vm175_vm3 }
 0x1e0   :  { %574 = vset.pattern.permute.xlu1 %v740_v43  ;;  %302 = vperm.xlu2 %573, %v283_v35   ;;  %v171_v1 = vsub.f32 1.0, %v170_v61 }
 0x1e1   :  { %371 = vperm.xlu1 %574, %v283_v35  }
 0x1e2   :  { %v172_v4 = vmul.f32 %v609_v58, %v171_v1 }
 0x1e4   :  { %v173_v6 = vadd.f32 %v609_v58, %v172_v4 }
 0x1e6   :  { %v177_v12 = vsel %vm176_vm5, %v609_v58, %v173_v6 }
 0x1e7   :  { %v182_v19 = vsel %vm179_vm7, %v181_v13, %v177_v12 }
 0x1e8   :  { %575 = vset.pattern.permute.xlu2 %v741_v46 }
 0x1e9   :  { %577 = vset.pattern.permute.xlu1 %v735_v24  ;;  %314 = vperm.xlu2 %575, %v283_v35  }
 0x1ea   :  { %343 = vperm.xlu1 %577, %v286_v45  }
 0x1f1   :  { %578 = vset.pattern.permute.xlu2 %v733_v22  ;;  %v815_v22 = vmul.f32 %v182_v19, %v802_v63 }
 0x1f2   :  { %411 = vperm.xlu2 %578, %v286_v45   ;;  %580 = vrot.lane.b32.xlu1 %v774_v16, %s742_s28  ;;  %v251_v16 = vmul.f32 -0.5, %v603_v53 }
 0x1f4   :  { %v252_v59 = vadd.f32 1.0, %v251_v16 }
 0x1f6   :  { %v253_v62 = vmul.f32 %v603_v53, %v252_v59 }
 0x1fa   :  { %585 = vrot.lane.b32.xlu2 %v776_v17, %s742_s28  ;;  %v250_v17 = vmul.f32 0.6931472, %v607_v57 }
 0x1fc   :  { %v256_v0 = vsel %vm255_vm1, %v253_v62, %v250_v17 }
 0x1fd   :  { %v257_v3 = vadd.f32 %v256_v0, %v241_v2 }
 0x1ff   :  { %v258_v5 = vsel %vm242_vm2, %v239_v48, %v257_v3 }
 0x200   :  { %v320_v9 = vperm.slane %v258_v5, 6  ;;  %v389_v14 = vperm.slane %v258_v5, 7  ;;  %v296_v24 = vperm.slane %v258_v5, 2  ;;  %v818_v25 = vmul.f32 %v258_v5, %v815_v22 }
 0x201   :  { %v308_v31 = vperm.slane %v258_v5, 4  ;;  %v365_v33 = vperm.slane %v258_v5, 3  ;;  %v377_v42 = vperm.slane %v258_v5, 5 }
 0x202   :  { %v321_v15 = vmul.f32 %v320_v9, %v63_v11  ;;  %v390_v20 = vmul.f32 %v389_v14, %v63_v11  ;;  %v297_v28 = vmul.f32 %v296_v24, %v63_v11  ;;  %v328_v30 = vperm.slane %v818_v25, 6 }
 0x203   :  { %v397_v34 = vperm.slane %v818_v25, 7  ;;  %v309_v40 = vmul.f32 %v308_v31, %v63_v11  ;;  %v366_v41 = vmul.f32 %v365_v33, %v63_v11  ;;  %v294_v45 = vperm.slane %v818_v25, 0 }
 0x204   :  { %v322_v21 = vmul.f32 1.442695, %v321_v15  ;;  %v391_v26 = vmul.f32 1.442695, %v390_v20  ;;  %v298_v35 = vmul.f32 1.442695, %v297_v28  ;;  %v378_v52 = vmul.f32 %v377_v42, %v63_v11 }
 0x205   :  { %v305_v47 = vperm.slane %v818_v25, 2  ;;  %v310_v48 = vmul.f32 1.442695, %v309_v40  ;;  %v367_v51 = vmul.f32 1.442695, %v366_v41  ;;  %v363_v17 = vperm.slane %v818_v25, 1 }
 0x206   :  { %610 = vpow2.f32 %v322_v21  ;;  %v379_v58 = vmul.f32 1.442695, %v378_v52  ;;  %v317_v0 = vperm.slane %v818_v25, 4  ;;  %v374_v5 = vperm.slane %v818_v25, 3 }
 0x207   :  { %612 = vpow2.f32 %v391_v26  ;;  %v386_v20 = vperm.slane %v818_v25, 5 }
 0x208   :  { %614 = vpow2.f32 %v298_v35 }
 0x209   :  { %616 = vpow2.f32 %v310_v48 }
 0x20a   :  { %618 = vpow2.f32 %v367_v51 }
 0x20b   :  { %620 = vpow2.f32 %v379_v58  ;;  %v422_v58 = vrot.slane %v783_v27, 4 }
 0x20c   :  { %v611_v63 = vpop.eup %610 }
 0x20d   :  { %v613_v43 = vpop.eup %612  ;;  %v330_v50 = vmul.f32 %v611_v63, %v611_v63 }
 0x20e   :  { %v615_v56 = vpop.eup %614  ;;  %v399_v59 = vmul.f32 %v613_v43, %v613_v43 }
 0x20f   :  { %v617_v4 = vpop.eup %616  ;;  %v333_v9 = vmul.f32 %v330_v50, %v330_v50 }
 0x210   :  { %v619_v6 = vpop.eup %618  ;;  %v402_v19 = vmul.f32 %v399_v59, %v399_v59 }
 0x211   :  { %v336_v24 = vmul.f32 %v611_v63, %v333_v9 }
 0x228   :  { %v395_v7 = vpop.permute.xlu2 %394 }
 0x229   :  { %v398_v37 = vmul.f32 %v397_v34, %v395_v7  ;;  %v405_v34 = vmul.f32 %v613_v43, %v402_v19 }
 0x22b   :  { %v400_v44 = vmul.f32 %v613_v43, %v398_v37 }
 0x22d   :  { %v401_v16 = vadd.f32 %v400_v44, %v398_v37 }
 0x22f   :  { %v403_v1 = vmul.f32 %v401_v16, %v399_v59 }
 0x231   :  { %v292_v23 = vpop.permute.xlu2 %291  ;;  %v404_v11 = vadd.f32 %v403_v1, %v401_v16 }
 0x232   :  { %v295_v49 = vmul.f32 %v294_v45, %v292_v23  ;;  %v621_v23 = vpop.eup %620 }
 0x233   :  { %v406_v28 = vmul.f32 %v613_v43, %v404_v11 }
 0x234   :  { %v300_v57 = vmul.f32 %v615_v56, %v295_v49 }
 0x23a   :  { %v303_v38 = vpop.permute.xlu2 %302 }
 0x23b   :  { %v306_v54 = vmul.f32 %v305_v47, %v303_v38  ;;  %v407_v38 = vadd.f32 %v406_v28, %v398_v37 }
 0x23d   :  { %v307_v61 = vadd.f32 %v306_v54, %v300_v57 }
 0x23f   :  { %v312_v7 = vmul.f32 %v617_v4, %v307_v61 }
 0x240   :  { %v384_v14 = vpop.permute.xlu0 %383 }
 0x241   :  { %v326_v32 = vpop.permute.xlu1 %325 }
 0x242   :  { %v329_v36 = vmul.f32 %v328_v30, %v326_v32  ;;  %v387_v30 = vmul.f32 %v386_v20, %v384_v14 }
 0x243   :  { %v315_v60 = vpop.permute.xlu2 %314 }
 0x244   :  { %v331_v39 = vmul.f32 %v611_v63, %v329_v36  ;;  %v318_v3 = vmul.f32 %v317_v0, %v315_v60  ;;  %v424_v0 = vmul.f32 %v422_v58, %v815_v22 }
 0x246   :  { %v332_v46 = vadd.f32 %v331_v39, %v329_v36  ;;  %v319_v15 = vadd.f32 %v318_v3, %v312_v7 }
 0x248   :  { %v334_v55 = vmul.f32 %v332_v46, %v330_v50  ;;  %v339_v32 = vmul.f32 %v336_v24, %v319_v15  ;;  %v456_v4 = vpop.permute.xlu0 %455 }
 0x24a   :  { %v361_v53 = vpop.permute.xlu1 %360  ;;  %v335_v62 = vadd.f32 %v334_v55, %v332_v46 }
 0x24b   :  { %v364_v2 = vmul.f32 %v363_v17, %v361_v53  ;;  %v355_v53 = vrot.slane %v783_v27, 5 }
 0x24c   :  { %v337_v10 = vmul.f32 %v611_v63, %v335_v62  ;;  %v412_v39 = vpop.permute.xlu2 %411 }
 0x24d   :  { %v369_v12 = vmul.f32 %v619_v6, %v364_v2  ;;  %v357_v60 = vmul.f32 %v355_v53, %v815_v22 }
 0x24e   :  { %v338_v26 = vadd.f32 %v337_v10, %v329_v36 }
 0x250   :  { %v340_v35 = vadd.f32 %v339_v32, %v338_v26 }
 0x253   :  { %v372_v8 = vpop.permute.xlu1 %371 }
 0x254   :  { %v375_v13 = vmul.f32 %v374_v5, %v372_v8  ;;  %v586_v50 = vpop.permute.xlu2 %585 }
 0x255   :  { %v587_v54 = vunpack.i.l.bf16 %v586_v50  ;;  %v588_v16 = vunpack.i.h.bf16 %v586_v50 }
 0x256   :  { %v376_v21 = vadd.f32 %v375_v13, %v369_v12 }
 0x258   :  { %v381_v31 = vmul.f32 %v621_v23, %v376_v21 }
 0x25a   :  { %v388_v33 = vadd.f32 %v387_v30, %v381_v31 }
 0x25c   :  { %v408_v40 = vmul.f32 %v405_v34, %v388_v33  ;;  %v344_v41 = vpop.permute.xlu1 %343 }
 0x25d   :  { %v346_v42 = vmul.f32 %v344_v41, %v340_v35 }
 0x25e   :  { %v409_v45 = vadd.f32 %v408_v40, %v407_v38 }
 0x25f   :  { %v347_v46 = vsel %vm100_vm6, %v346_v42, 0.0 }
 0x260   :  { %v414_v25 = vmul.f32 %v412_v39, %v409_v45  ;;  %v348_v44 = vrot.slane %v347_v46, 4 }
 0x262   :  { %v415_v63 = vsel %vm100_vm6, %v414_v25, 0.0  ;;  %v349_v36 = vadd.f32 %v348_v44, %v347_v46 }
 0x263   :  { %v416_v47 = vrot.slane %v415_v63, 4 }
 0x264   :  { %v350_v48 = vrot.slane %v349_v36, 2  ;;  %v581_v49 = vpop.permute.xlu1 %580 }
 0x265   :  { %v417_v51 = vadd.f32 %v416_v47, %v415_v63  ;;  %v582_v43 = vunpack.i.l.bf16 %v581_v49  ;;  %v583_v52 = vunpack.i.h.bf16 %v581_v49 }
 0x266   :  { %v351_v37 = vadd.f32 %v350_v48, %v349_v36 }
 0x267   :  { %486 = vmatpush.msra.mxu3 %v582_v43  ;;  %v418_v55 = vrot.slane %v417_v51, 2 }
 0x268   :  { %v352_v56 = vrot.slane %v351_v37, 1 }
 0x269   :  { %487 = vmatpush.msra.mxu3 %v583_v52  ;;  %v419_v57 = vadd.f32 %v418_v55, %v417_v51 }
 0x26a   :  { %v353_v59 = vadd.f32 %v352_v56, %v351_v37 }
 0x26b   :  { %488 = vmatpush.msra.mxu3 %v587_v54  ;;  %v420_v17 = vrot.slane %v419_v57, 1 }
 0x26c   :  { %v358_v61 = vadd.f32 %v357_v60, %v353_v59 }
 0x26d   :  { %489 = vmatpush.msra.mxu3 %v588_v16  ;;  %v421_v62 = vadd.f32 %v420_v17, %v419_v57 }
 0x26e   :  { %v427_v2 = vrot.slane %v358_v61, 6 }
 0x26f   :  { %v425_v1 = vadd.f32 %v424_v0, %v421_v62 }
 0x271   :  { %v430_v3 = vrot.slane %v425_v1, 6 }
 0x273   :  { %v433_v5 = vsel %vm432_vm8, %v427_v2, %v430_v3 }
 0x274   :  { %v458_v6 = vmul.f32 %v456_v4, %v433_v5 }
 0x276   :  { %540 = vmatmul.msk.f32.vlgmr.msra.gmra.mxu3 %vm100_vm6, %v458_v6 }
 0x2f9   :  { %v491_v7 = vpop.f32.mrf.mxu3 }
 0x2fa   :  { %v494_v8 = vmul.f32 %v491_v7, %v491_v7 }
 0x2fc   :  { %v496_v9 = vsel %vm495_vm9, %v494_v8, 0.0 }
 0x2fd   :  { %497 = vadd.xlane.f32.xlu1 %v496_v9 }
 0x370   :  { %v498_v10 = vpop.xlane.xlu1 %497 }
 0x371   :  { %v499_v11 = vmul.f32 %v498_v10, %v780_v18 }
 0x373   :  { %v500_v12 = vadd.f32 1e-05, %v499_v11 }
 0x375   :  { %622 = vrsqrt.f32 %v500_v12  ;;  %vm507_vm11 = vweird.f32 %v500_v12 }
 0x37b   :  { %v623_v22 = vpop.eup %622 }
 0x37c   :  { %v502_v13 = vmul.f32 %v623_v22, %v500_v12  ;;  %vm508_vm10 = vweird.f32 %v623_v22 }
 0x37d   :  { %vm509_vm6 = vmor %vm507_vm11, %vm508_vm10 }
 0x37e   :  { %v503_v14 = vmul.f32 %v623_v22, %v502_v13 }
 0x380   :  { %v504_v15 = vmul.f32 0.5, %v503_v14 }
 0x382   :  { %v505_v19 = vsub.f32 1.5, %v504_v15 }
 0x384   :  { %v506_v20 = vmul.f32 %v623_v22, %v505_v19 }
 0x386   :  { %v510_v21 = vsel %vm509_vm6, %v623_v22, %v506_v20 }
 0x387   :  { %v511_v23 = vmul.f32 %v510_v21, %v491_v7 }
 0x389   :  { %v512_v18 = vmul.f32 %v511_v23, %v98_v29 }
 0x38b   :  { %513 = vst.msk [vmem:[#allocation8] sm:$0x3] %vm495_vm9, %v512_v18 }
 0x38c   :  { %524 = dma.vmem_to_hbm [thread:$0]  %s520_s30, 32, %s522_s6, [#allocation4]  }
 0x38d   :  { %724 = dma.done.wait [#allocation4], 32  }
 0x38e   :  { %725 = vsyncadd [#allocation4], 4294967264 }
 0x38f   :  { %529 = vsyncpa [#allocation3], 1 }
 0x390   :  { %530 = vsyncpa [#allocation6], 1 }
 0x391   :  { %531 = vsyncpa [#allocation4], 1 }

</bundles_post_ra>
